<compile_context>
chip_gen: v7x
topology: tpu7x:2x2x1
jax: 0.10.0
libtpu: 0.0.40
codegen_flags: <defaults>
</compile_context>

<pallas_src>
import functools

import jax
import jax.numpy as jnp
from jax.experimental import pallas as pl
from jax.experimental.pallas import tpu as pltpu


def _round_up(x, m):
    return (x + m - 1) // m * m


def _mlp_kernel(x_ref, w1_ref, b1_ref, w2_ref, b2_ref, o_ref, *, has_softmax):
    # x arrives as f32; cast to bf16 here (VPU, hidden under the x DMA) so the
    # wrapper never makes a separate HBM pass for the convert.
    x = x_ref[...].astype(jnp.bfloat16)
    # Layer 1: bf16 MXU matmul, f32 accumulation; bias + ReLU in f32.
    h = jnp.dot(x, w1_ref[...], preferred_element_type=jnp.float32)
    h = jnp.maximum(h + b1_ref[...], 0.0)          # b1 is (1, H) -> broadcasts
    # Layer 2: cast hidden to bf16 for the MXU, accumulate in f32.
    y = jnp.dot(h.astype(jnp.bfloat16), w2_ref[...],
                preferred_element_type=jnp.float32)
    y = y + b2_ref[...]                            # b2 is (1, O)
    if has_softmax:
        y = y - jnp.max(y, axis=-1, keepdims=True)
        e = jnp.exp(y)
        # approx reciprocal lands on the EUP slot (same as exp) -> essentially free.
        y = e * pl.reciprocal(jnp.sum(e, axis=-1, keepdims=True), approx=True)
    o_ref[...] = y.astype(o_ref.dtype)


def mlp_forward(x, w1, b1, w2, b2, *, has_softmax=False, tm=4096):
    """Pallas forward pass of the MLP.

    x:  [B, 60]  float32 (cast to bf16 inside the kernel)
    w1: [60, 40] float32   b1: [1, 40] float32
    w2: [40, O]  float32   b2: [1, O]  float32
    returns [B, O] float32
    """
    B, F = x.shape
    H = w1.shape[1]
    O = w2.shape[1]

    # Batch tile: large to amortize per-grid-step overhead, multiple of 8,
    # never larger than the (8-rounded) batch; and whenever B > 8, small enough
    # that the grid has >= 2 steps so both v7x TensorCores get work.
    tm = max(8, min(tm, _round_up(B, 8)))
    if B > 8:
        tm = min(tm, max(8, _round_up(pl.cdiv(B, 2), 8)))
    grid = (pl.cdiv(B, tm),)   # ragged last tile handled by Pallas (no jnp.pad)

    # Weights are tiny; pre-casting them to bf16 costs nothing and keeps the
    # per-step kernel body minimal.  Biases stay f32.
    w1_in = w1.astype(jnp.bfloat16)
    w2_in = w2.astype(jnp.bfloat16)

    kernel = functools.partial(_mlp_kernel, has_softmax=has_softmax)
    return pl.pallas_call(
        kernel,
        out_shape=jax.ShapeDtypeStruct((B, O), x.dtype),
        grid=grid,
        in_specs=[
            pl.BlockSpec((tm, F), lambda i: (i, 0)),   # x: streamed per batch tile (f32)
            pl.BlockSpec((F, H), lambda i: (0, 0)),    # weights: VMEM-resident
            pl.BlockSpec((1, H), lambda i: (0, 0)),
            pl.BlockSpec((H, O), lambda i: (0, 0)),
            pl.BlockSpec((1, O), lambda i: (0, 0)),
        ],
        out_specs=pl.BlockSpec((tm, O), lambda i: (i, 0)),
        compiler_params=pltpu.CompilerParams(
            dimension_semantics=("parallel",),         # shards across TCs on v7x
            vmem_limit_bytes=32 * 1024 * 1024,         # v5e default (16 MiB) is the binding ceiling
        ),
    )(x, w1_in, b1, w2_in, b2)


def init_mlp_params(key, in_features=60, hidden=40, out_size=3, dtype=jnp.float32):
    """Deterministic init mimicking PyTorch Linear default (U(-1/sqrt(fan_in), +))."""
    k1, k2, k3, k4 = jax.random.split(key, 4)
    bound1 = 1.0 / jnp.sqrt(in_features)
    bound2 = 1.0 / jnp.sqrt(hidden)
    w1 = jax.random.uniform(k1, (in_features, hidden), dtype, -bound1, bound1)
    b1 = jax.random.uniform(k2, (1, hidden), dtype, -bound1, bound1)
    w2 = jax.random.uniform(k3, (hidden, out_size), dtype, -bound2, bound2)
    b2 = jax.random.uniform(k4, (1, out_size), dtype, -bound2, bound2)
    return w1, b1, w2, b2


def _ref_forward(x, w1, b1, w2, b2, has_softmax):
    y = jnp.maximum(x @ w1 + b1, 0.0) @ w2 + b2
    if has_softmax:
        y = jax.nn.softmax(y, axis=-1)
    return y


if __name__ == "__main__":
    # num_in_features = 6 + 9 * 6 = 60, hidden = 40, out_size = 3
    F, H, O = 60, 40, 3
    key = jax.random.PRNGKey(0)
    kx, kp, kx2 = jax.random.split(key, 3)
    w1, b1, w2, b2 = init_mlp_params(kp, F, H, O)

    # Small batch, single grid step, no softmax (module default).
    B = 8
    x = jax.random.normal(kx, (B, F), jnp.float32)
    y = jax.block_until_ready(mlp_forward(x, w1, b1, w2, b2, has_softmax=False))
    ref = _ref_forward(x, w1, b1, w2, b2, False)
    assert y.shape == (B, O)
    # bf16 matmul operands -> loosened tolerance vs the f32 reference.
    assert jnp.allclose(y, ref, atol=3e-2, rtol=3e-2)

    # Larger batch: multiple grid steps + a ragged last tile (300 % 128 != 0),
    # with softmax enabled.
    B2 = 300
    x2 = jax.random.normal(kx2, (B2, F), jnp.float32)
    y2 = jax.block_until_ready(
        mlp_forward(x2, w1, b1, w2, b2, has_softmax=True, tm=128))
    ref2 = _ref_forward(x2, w1, b1, w2, b2, True)
    assert y2.shape == (B2, O)
    assert jnp.allclose(y2, ref2, atol=3e-2, rtol=3e-2)

    # Default tm path (auto-capped so the grid still has >= 2 steps).
    y3 = jax.block_until_ready(mlp_forward(x2, w1, b1, w2, b2, has_softmax=False))
    ref3 = _ref_forward(x2, w1, b1, w2, b2, False)
    assert jnp.allclose(y3, ref3, atol=3e-2, rtol=3e-2)

    print("KERNEL_OK")
</pallas_src>

<mosaic_0001>
module attributes {stable_mosaic.version = 11 : i64} {
  func.func @_mlp_kernel(%arg0: i32, %arg1: memref<8x60xf32, #tpu.memory_space<vmem>>, %arg2: memref<60x40xbf16, #tpu.memory_space<vmem>>, %arg3: memref<1x40xf32, #tpu.memory_space<vmem>>, %arg4: memref<40x3xbf16, #tpu.memory_space<vmem>>, %arg5: memref<1x3xf32, #tpu.memory_space<vmem>>, %arg6: memref<8x3xf32, #tpu.memory_space<vmem>>) attributes {dimension_semantics = [#tpu.dimension_semantics<parallel>], iteration_bounds = array<i64: 1>, scalar_prefetch = 0 : i64, scratch_operands = 0 : i64, tpu.core_type = #tpu.core_type<tc>, window_params = [{transform_indices = @transform_0, window_bounds = array<i64: 8, 60>}, {pipeline_mode = #tpu.pipeline_mode<synchronous>, transform_indices = @transform_1, window_bounds = array<i64: 60, 40>}, {pipeline_mode = #tpu.pipeline_mode<synchronous>, transform_indices = @transform_2, window_bounds = array<i64: 1, 40>}, {pipeline_mode = #tpu.pipeline_mode<synchronous>, transform_indices = @transform_3, window_bounds = array<i64: 40, 3>}, {pipeline_mode = #tpu.pipeline_mode<synchronous>, transform_indices = @transform_4, window_bounds = array<i64: 1, 3>}, {transform_indices = @transform_5, window_bounds = array<i64: 8, 3>}]} {
    %c0 = arith.constant 0 : index
    %c0_0 = arith.constant 0 : index
    %0 = vector.load %arg1[%c0, %c0_0] : memref<8x60xf32, #tpu.memory_space<vmem>>, vector<8x60xf32>
    %1 = arith.truncf %0 : vector<8x60xf32> to vector<8x60xbf16>
    %c0_1 = arith.constant 0 : index
    %c0_2 = arith.constant 0 : index
    %2 = vector.load %arg2[%c0_1, %c0_2] : memref<60x40xbf16, #tpu.memory_space<vmem>>, vector<60x40xbf16>
    %cst = arith.constant dense<0.000000e+00> : vector<8x40xf32>
    %3 = tpu.matmul %1, %2, %cst {dimension_numbers = #tpu.dot_dimension_numbers<[1], [0], [0], [1], [0, 0, 1, 1], [], []>} : vector<8x60xbf16>, vector<60x40xbf16>, vector<8x40xf32> -> vector<8x40xf32>
    %c0_3 = arith.constant 0 : index
    %c0_4 = arith.constant 0 : index
    %4 = vector.load %arg3[%c0_3, %c0_4] : memref<1x40xf32, #tpu.memory_space<vmem>>, vector<1x40xf32>
    %5 = vector.broadcast %4 : vector<1x40xf32> to vector<8x40xf32>
    %6 = arith.addf %3, %5 : vector<8x40xf32>
    %cst_5 = arith.constant 0.000000e+00 : f32
    %7 = vector.broadcast %cst_5 : f32 to vector<8x40xf32>
    %8 = arith.maximumf %6, %7 : vector<8x40xf32>
    %9 = arith.truncf %8 : vector<8x40xf32> to vector<8x40xbf16>
    %c0_6 = arith.constant 0 : index
    %c0_7 = arith.constant 0 : index
    %10 = vector.load %arg4[%c0_6, %c0_7] : memref<40x3xbf16, #tpu.memory_space<vmem>>, vector<40x3xbf16>
    %cst_8 = arith.constant dense<0.000000e+00> : vector<8x3xf32>
    %11 = tpu.matmul %9, %10, %cst_8 {dimension_numbers = #tpu.dot_dimension_numbers<[1], [0], [0], [1], [0, 0, 1, 1], [], []>} : vector<8x40xbf16>, vector<40x3xbf16>, vector<8x3xf32> -> vector<8x3xf32>
    %c0_9 = arith.constant 0 : index
    %c0_10 = arith.constant 0 : index
    %12 = vector.load %arg5[%c0_9, %c0_10] : memref<1x3xf32, #tpu.memory_space<vmem>>, vector<1x3xf32>
    %13 = vector.broadcast %12 : vector<1x3xf32> to vector<8x3xf32>
    %14 = arith.addf %11, %13 : vector<8x3xf32>
    %c0_11 = arith.constant 0 : index
    %c0_12 = arith.constant 0 : index
    %15 = vector.load %arg6[%c0_11, %c0_12] : memref<8x3xf32, #tpu.memory_space<vmem>>, vector<8x3xf32>
    tpu.vector_store %arg6[%c0_11, %c0_12], %14 {strides = array<i32>} : memref<8x3xf32, #tpu.memory_space<vmem>>, vector<8x3xf32>,
    return
  }
  func.func @transform_0(%arg0: i32) -> (i32, i32) {
    %c0_i32 = arith.constant 0 : i32
    %c0_i32_0 = arith.constant 0 : i32
    return %arg0, %c0_i32 : i32, i32
  }
  func.func @transform_1(%arg0: i32) -> (i32, i32) {
    %c0_i32 = arith.constant 0 : i32
    %c0_i32_0 = arith.constant 0 : i32
    %c0_i32_1 = arith.constant 0 : i32
    return %c0_i32, %c0_i32_0 : i32, i32
  }
  func.func @transform_2(%arg0: i32) -> (i32, i32) {
    %c0_i32 = arith.constant 0 : i32
    %c0_i32_0 = arith.constant 0 : i32
    %c0_i32_1 = arith.constant 0 : i32
    return %c0_i32, %c0_i32_0 : i32, i32
  }
  func.func @transform_3(%arg0: i32) -> (i32, i32) {
    %c0_i32 = arith.constant 0 : i32
    %c0_i32_0 = arith.constant 0 : i32
    %c0_i32_1 = arith.constant 0 : i32
    return %c0_i32, %c0_i32_0 : i32, i32
  }
  func.func @transform_4(%arg0: i32) -> (i32, i32) {
    %c0_i32 = arith.constant 0 : i32
    %c0_i32_0 = arith.constant 0 : i32
    %c0_i32_1 = arith.constant 0 : i32
    return %c0_i32, %c0_i32_0 : i32, i32
  }
  func.func @transform_5(%arg0: i32) -> (i32, i32) {
    %c0_i32 = arith.constant 0 : i32
    %c0_i32_0 = arith.constant 0 : i32
    return %arg0, %c0_i32 : i32, i32
  }
}

</mosaic_0001>

<bundles_post_ra>
// kernel: tpu_custom_call.1
= control target key start
LH: loop header
LB: loop body
LE: loop exit
PB: predicated region body
PF: predicated region fallthrough
CT: control target
= control target key end

     0   :  { %v243_v0 = vmov 0.0   ;;  %vm244_vm0 = vmmov 0   ;;  %vm65_vm1 = vcmask 1045504   ;;  %vm61_vm2 = vcmask 490496   ;;  %s308_s1 = inlined_call_operand.vmem [shape: bf16[60,40], index: 1, kind: input, shape index: {}]   ;;  %s309_s3 = inlined_call_operand.vmem [shape: bf16[40,3], index: 3, kind: input, shape index: {}]   ;;  %s310_s0 = inlined_call_operand.vmem [shape: f32[8,60], index: 0, kind: input, shape index: {}]   ;;  %s311_s2 = inlined_call_operand.vmem [shape: f32[1,40], index: 2, kind: input, shape index: {}]   ;;  %s312_s4 = inlined_call_operand.vmem [shape: f32[1,3], index: 4, kind: input, shape index: {}]   ;;  %s313_s5 = inlined_call_operand.vmem [shape: f32[8,3], index: 5, kind: output, shape index: {}]  }
   0x1   :  { %212 = vmatprep.subr.bf16.mxu0 %v243_v0  ;;  %v236_v1 = vld [vmem:[%s308_s1] sm:$0xff]   ;;  %220 = vmatprep.mubr.msk.bf16.mxu0 %vm244_vm0, %v243_v0  ;;  %v237_v2 = vld [vmem:[%s308_s1 + $0x8] sm:$0xff]   ;;  %v238_v4 = vld [vmem:[%s308_s1 + $0x10] sm:$0xff]   ;;  %vm142_vm3 = vcmask 1043456   ;;  %vm138_vm4 = vcmask 326656   ;;  %vm186_vm5 = vcmask 23552  }
   0x2   :  { %224 = vmatprep.subr.bf16.mxu1 %v243_v0  ;;  %230 = vmatprep.mubr.msk.bf16.mxu1 %vm244_vm0, %v243_v0  ;;  %v240_v3 = vld [vmem:[%s309_s3] sm:$0xff]   ;;  %v239_v5 = vld [vmem:[%s308_s1 + $0x18] sm:$0x3f]   ;;  %v241_v9 = vld [vmem:[%s309_s3 + $0x8] sm:$0xff]  }
   0x3   :  { %213 = vmatpush3.bf16.msra.mxu0 %v236_v1  ;;  %225 = vmatpush3.bf16.msra.mxu1 %v240_v3  ;;  %v21_v6 = vld [vmem:[%s310_s0] sm:$0xff]  ;;  %v67_v7 = vsel %vm65_vm1, %v239_v5, 0  ;;  %v242_v10 = vld [vmem:[%s309_s3 + $0x10] ss:$0 sps:$4 sm:$0xff]  }
   0x4   :  { %214 = vmatprep.subr.bf16.mxu0 %v243_v0  ;;  %226 = vmatprep.subr.bf16.mxu1 %v243_v0  ;;  %v22_v8 = vpack.c.bf16 %v21_v6, %v21_v6  ;;  %v144_v11 = vsel %vm142_vm3, %v242_v10, 0  ;;  %v192_v12 = vld [vmem:[%s311_s2] ss:$0 sm:$0xff] }
   0x5   :  { %v198_v20 = vld [vmem:[%s312_s4] ss:$0 sm:$0xff] }
   0x7   :  { %215 = vmatpush3.bf16.msra.mxu0 %v237_v2  ;;  %227 = vmatpush3.bf16.msra.mxu1 %v241_v9 }
   0x8   :  { %216 = vmatprep.subr.bf16.mxu0 %v243_v0  ;;  %228 = vmatprep.subr.bf16.mxu1 %v243_v0 }
   0xb   :  { %217 = vmatpush3.bf16.msra.mxu0 %v238_v4  ;;  %229 = vmatpush3.bf16.msra.mxu1 %v144_v11 }
   0xc   :  { %218 = vmatprep.subr.bf16.mxu0 %v243_v0 }
   0xf   :  { %219 = vmatpush3.bf16.msra.mxu0 %v67_v7 }
  0x12   :  { %221 = vmatmul.mubr.msk.bf16.vlgmr.msra.gmra.mrb[0].mxu0 %vm61_vm2, %v22_v8 }
  0xe5   :  { %v103_v13 = vpop.f32.mrb[0].mxu0 }
  0xe6   :  { %v104_v14 = vadd.f32 %v192_v12, %v103_v13  ;;  %v222_v15 = vpop.f32.mrb[1].mxu0 }
  0xe7   :  { %v106_v16 = vpop.f32.mrb[2].mxu0 }
  0xe8   :  { %v109_v17 = vmax.f32 %v104_v14, 0.0  ;;  %v223_v18 = vpop.f32.mrb[3].mxu0 }
  0xea   :  { %v110_v19 = vpack.c.bf16 %v109_v17, %v109_v17 }
  0xec   :  { %231 = vmatmul.mubr.msk.bf16.vlgmr.msra.gmra.mrb[0].mxu1 %vm138_vm4, %v110_v19 }
 0x1bf   :  { %v180_v21 = vpop.f32.mrb[0].mxu1 }
 0x1c0   :  { %v181_v22 = vadd.f32 %v198_v20, %v180_v21  ;;  %v232_v23 = vpop.f32.mrb[1].mxu1 }
 0x1c1   :  { %v183_v24 = vpop.f32.mrb[2].mxu1 }
 0x1c2   :  { %187 = vst.msk [vmem:[%s313_s5] sm:$0xff] %vm186_vm5, %v181_v22  ;;  %v233_v25 = vpop.f32.mrb[3].mxu1 }

</bundles_post_ra>
